<compile_context>
chip_gen: v5e
topology: v5e:2x2
jax: 0.10.0
libtpu: 0.0.40
codegen_flags: <defaults>
</compile_context>

<pallas_src>
import numpy as np
import jax
import jax.numpy as jnp
from jax.experimental import pallas as pl
from jax.experimental.pallas import tpu as pltpu

GROUPS = 16        # conv groups == output channels
CG = 16            # input channels per group (256 / 16)
KH = KW = 8        # kernel size == stride


def _fir_kernel(x_ref, w_ref, sel_l_ref, sel_r_ref, o_ref):
    # x_ref:     (1, CG, RH*KH, W)  raw NCHW tile for (n, group g, RH output rows)
    # w_ref:     (1, RH*KH, W)      tap_g[kh, w % 8], tiled over the RH output rows
    # sel_l_ref: (RH, RH*KH)        0/1 selector: reduce kh within each output row
    # sel_r_ref: (W, OW)            0/1 selector: reduce kw / pick each output column
    # o_ref:     (1, 1, RH, OW)
    xc = jnp.sum(x_ref[0], axis=0)                     # channel reduce (VPU adds)   (RH*KH, W)
    xcw = xc * w_ref[0]                                # tap weighting (VPU)         (RH*KH, W)
    t = jnp.dot(xcw, sel_r_ref[...],
                preferred_element_type=jnp.float32)    # kw reduce + select (MXU)    (RH*KH, OW)
    o_ref[0, 0] = jnp.dot(sel_l_ref[...], t,
                          preferred_element_type=jnp.float32)   # kh reduce (MXU)    (RH, OW)


def _choose_rows_per_step(OH, W):
    """Output rows per grid step.

    Keep the x tile around ~4 MiB (≈8 MiB once double-buffered): comfortably inside the
    default scoped-VMEM limit on v5e/v6e and v7x's 64 MiB VMEM, while big enough to
    amortize the ~0.35 us per-grid-step overhead.
    """
    budget_bytes = 4 << 20
    row_bytes = CG * KH * W * 4          # bytes of x feeding one output row
    max_rows = max(1, budget_bytes // row_bytes)
    if OH <= max_rows:
        return OH
    divisors = [d for d in range(1, max_rows + 1) if OH % d == 0]
    mult8 = [d for d in divisors if d % 8 == 0]   # prefer sublane-aligned output blocks
    return max(mult8) if mult8 else max(divisors)


def fir_filter_pallas(x, taps):
    """x: (N, 256, H, W) float32 NCHW.  taps: 1-D float array (len <= 1024).
    Returns (N, 16, H//8, W//8) float32, matching the PyTorch module."""
    N, C, H, W = x.shape
    assert C == GROUPS * CG and H % KH == 0 and W % KW == 0
    OH, OW = H // KH, W // KW
    RH = _choose_rows_per_step(OH, W)     # output rows handled per grid step
    R = OH // RH

    # ---- deterministic parameter setup (tiny, host-side) ----
    taps = np.asarray(taps, dtype=np.float32)
    taps = np.pad(taps, (0, GROUPS * KH * KW - taps.shape[0]))
    sections = taps.reshape(GROUPS, KH, KW)                 # per-group 8x8 taps
    w_lane = np.tile(sections, (1, 1, OW))                  # (G, KH, W): tap_g[kh, w % 8]
    w_tile = np.tile(w_lane, (1, RH, 1))                    # (G, RH*KH, W)
    # 0/1 selector matrices: fold kh-reduce and kw-segment-reduce into MXU matmuls.
    sel_l = (np.arange(RH)[:, None] ==
             (np.arange(RH * KH)[None, :] // KH)).astype(np.float32)        # (RH, RH*KH)
    sel_r = ((np.arange(W)[:, None] // KW) ==
             np.arange(OW)[None, :]).astype(np.float32)                     # (W, OW)
    # TODO(synk): for very wide images (W >~ 4096) sel_r grows as W*OW*4 B; build it
    # in-kernel from broadcasted_iota (or a VMEM scratch filled on the first step) instead.

    w_tile = jnp.asarray(w_tile)
    sel_l = jnp.asarray(sel_l)
    sel_r = jnp.asarray(sel_r)

    out = pl.pallas_call(
        _fir_kernel,
        out_shape=jax.ShapeDtypeStruct((N, GROUPS, OH, OW), jnp.float32),
        grid=(GROUPS, N, R),               # g outermost -> tap block never re-DMA'd inside n/r
        in_specs=[
            pl.BlockSpec((1, CG, RH * KH, W), lambda g, n, r: (n, g, r, 0)),  # raw NCHW x tile
            pl.BlockSpec((1, RH * KH, W), lambda g, n, r: (g, 0, 0)),         # per-group taps
            pl.BlockSpec((RH, RH * KH), lambda g, n, r: (0, 0)),              # kh selector
            pl.BlockSpec((W, OW), lambda g, n, r: (0, 0)),                    # kw selector
        ],
        out_specs=pl.BlockSpec((1, 1, RH, OW), lambda g, n, r: (n, g, r, 0)),
        compiler_params=pltpu.CompilerParams(
            dimension_semantics=("parallel", "parallel", "parallel")),
    )(x, w_tile, sel_l, sel_r)
    return out


def fir_filter_reference(x, taps):
    """Pure-JAX reference identical to the PyTorch grouped conv."""
    taps = np.asarray(taps, dtype=np.float32)
    taps = np.pad(taps, (0, GROUPS * KH * KW - taps.shape[0]))
    w = taps.reshape(GROUPS, 1, KH, KW)
    w = np.repeat(w, CG, axis=1)                            # (16, 16, 8, 8) OIHW
    return jax.lax.conv_general_dilated(
        x, jnp.asarray(w), window_strides=(KH, KW), padding="VALID",
        dimension_numbers=("NCHW", "OIHW", "NCHW"),
        feature_group_count=GROUPS)


if __name__ == "__main__":
    key = jax.random.PRNGKey(0)
    kx, kt = jax.random.split(key)

    # Small shapes consistent with the module: 256 in-channels required, H=W=16 (divisible by 8)
    x = jax.random.normal(kx, (2, 256, 16, 16), dtype=jnp.float32)
    taps = np.asarray(jax.random.normal(kt, (900,), dtype=jnp.float32))  # padded to 1024 internally

    out = jax.block_until_ready(fir_filter_pallas(x, taps))

    ref = fir_filter_reference(x, taps)
    assert out.shape == ref.shape == (2, GROUPS, 2, 2)
    np.testing.assert_allclose(np.asarray(out), np.asarray(ref), rtol=1e-4, atol=1e-4)
    print("KERNEL_OK")
</pallas_src>

<mosaic_0001>
module attributes {stable_mosaic.version = 11 : i64} {
  func.func @_fir_kernel(%arg0: i32, %arg1: i32, %arg2: i32, %arg3: memref<1x16x16x16xf32, #tpu.memory_space<vmem>>, %arg4: memref<1x16x16xf32, #tpu.memory_space<vmem>>, %arg5: memref<2x16xf32, #tpu.memory_space<vmem>>, %arg6: memref<16x2xf32, #tpu.memory_space<vmem>>, %arg7: memref<1x1x2x2xf32, #tpu.memory_space<vmem>>) attributes {dimension_semantics = [#tpu.dimension_semantics<parallel>, #tpu.dimension_semantics<parallel>, #tpu.dimension_semantics<parallel>], iteration_bounds = array<i64: 16, 2, 1>, scalar_prefetch = 0 : i64, scratch_operands = 0 : i64, tpu.core_type = #tpu.core_type<tc>, window_params = [{transform_indices = @transform_0, window_bounds = array<i64: 1, 16, 16, 16>}, {transform_indices = @transform_1, window_bounds = array<i64: 1, 16, 16>}, {pipeline_mode = #tpu.pipeline_mode<synchronous>, transform_indices = @transform_2, window_bounds = array<i64: 2, 16>}, {pipeline_mode = #tpu.pipeline_mode<synchronous>, transform_indices = @transform_3, window_bounds = array<i64: 16, 2>}, {transform_indices = @transform_4, window_bounds = array<i64: 1, 1, 2, 2>}]} {
    %c0 = arith.constant 0 : index
    %c0_0 = arith.constant 0 : index
    %c0_1 = arith.constant 0 : index
    %c0_2 = arith.constant 0 : index
    %0 = vector.load %arg3[%c0, %c0_0, %c0_1, %c0_2] : memref<1x16x16x16xf32, #tpu.memory_space<vmem>>, vector<1x16x16x16xf32>
    %1 = vector.shape_cast %0 : vector<1x16x16x16xf32> to vector<16x16x16xf32>
    %cst = arith.constant dense<0.000000e+00> : vector<16x16xf32>
    %2 = vector.multi_reduction <add>, %1, %cst [0] : vector<16x16x16xf32> to vector<16x16xf32>
    %c0_3 = arith.constant 0 : index
    %c0_4 = arith.constant 0 : index
    %c0_5 = arith.constant 0 : index
    %3 = vector.load %arg4[%c0_3, %c0_4, %c0_5] : memref<1x16x16xf32, #tpu.memory_space<vmem>>, vector<1x16x16xf32>
    %4 = vector.shape_cast %3 : vector<1x16x16xf32> to vector<16x16xf32>
    %5 = arith.mulf %2, %4 : vector<16x16xf32>
    %c0_6 = arith.constant 0 : index
    %c0_7 = arith.constant 0 : index
    %6 = vector.load %arg6[%c0_6, %c0_7] : memref<16x2xf32, #tpu.memory_space<vmem>>, vector<16x2xf32>
    %cst_8 = arith.constant dense<0.000000e+00> : vector<16x2xf32>
    %7 = tpu.matmul %5, %6, %cst_8 {dimension_numbers = #tpu.dot_dimension_numbers<[1], [0], [0], [1], [0, 0, 1, 1], [], []>} : vector<16x16xf32>, vector<16x2xf32>, vector<16x2xf32> -> vector<16x2xf32>
    %c0_9 = arith.constant 0 : index
    %c0_10 = arith.constant 0 : index
    %8 = vector.load %arg5[%c0_9, %c0_10] : memref<2x16xf32, #tpu.memory_space<vmem>>, vector<2x16xf32>
    %cst_11 = arith.constant dense<0.000000e+00> : vector<2x2xf32>
    %9 = tpu.matmul %8, %7, %cst_11 {dimension_numbers = #tpu.dot_dimension_numbers<[1], [0], [0], [1], [0, 0, 1, 1], [], []>} : vector<2x16xf32>, vector<16x2xf32>, vector<2x2xf32> -> vector<2x2xf32>
    %c0_12 = arith.constant 0 : index
    %c0_13 = arith.constant 0 : index
    %c0_14 = arith.constant 0 : index
    %c0_15 = arith.constant 0 : index
    %10 = vector.load %arg7[%c0_12, %c0_13, %c0_14, %c0_15] : memref<1x1x2x2xf32, #tpu.memory_space<vmem>>, vector<1x1x2x2xf32>
    %11 = vector.shape_cast %10 : vector<1x1x2x2xf32> to vector<2x2xf32>
    %12 = vector.shape_cast %9 : vector<2x2xf32> to vector<1x1x2x2xf32>
    tpu.vector_store %arg7[%c0_12, %c0_13, %c0_14, %c0_15], %12 {strides = array<i32>} : memref<1x1x2x2xf32, #tpu.memory_space<vmem>>, vector<1x1x2x2xf32>,
    return
  }
  func.func @transform_0(%arg0: i32, %arg1: i32, %arg2: i32) -> (i32, i32, i32, i32) {
    %c0_i32 = arith.constant 0 : i32
    %c0_i32_0 = arith.constant 0 : i32
    return %arg1, %arg0, %arg2, %c0_i32 : i32, i32, i32, i32
  }
  func.func @transform_1(%arg0: i32, %arg1: i32, %arg2: i32) -> (i32, i32, i32) {
    %c0_i32 = arith.constant 0 : i32
    %c0_i32_0 = arith.constant 0 : i32
    %c0_i32_1 = arith.constant 0 : i32
    return %arg0, %c0_i32, %c0_i32_0 : i32, i32, i32
  }
  func.func @transform_2(%arg0: i32, %arg1: i32, %arg2: i32) -> (i32, i32) {
    %c0_i32 = arith.constant 0 : i32
    %c0_i32_0 = arith.constant 0 : i32
    %c0_i32_1 = arith.constant 0 : i32
    return %c0_i32, %c0_i32_0 : i32, i32
  }
  func.func @transform_3(%arg0: i32, %arg1: i32, %arg2: i32) -> (i32, i32) {
    %c0_i32 = arith.constant 0 : i32
    %c0_i32_0 = arith.constant 0 : i32
    %c0_i32_1 = arith.constant 0 : i32
    return %c0_i32, %c0_i32_0 : i32, i32
  }
  func.func @transform_4(%arg0: i32, %arg1: i32, %arg2: i32) -> (i32, i32, i32, i32) {
    %c0_i32 = arith.constant 0 : i32
    %c0_i32_0 = arith.constant 0 : i32
    return %arg1, %arg0, %arg2, %c0_i32 : i32, i32, i32, i32
  }
}

</mosaic_0001>

<bundles_post_ra>
// kernel: tpu_custom_call.1
= control target key start
LH: loop header
LB: loop body
LE: loop exit
PB: predicated region body
PF: predicated region fallthrough
CT: control target
= control target key end

     0   :  { %s687_s15 = smov 0   ;;  %s689_s16 = smov 0   ;;  %s832_s0 = inlined_call_operand.vmem [shape: f32[2,256,16,16], index: 0, kind: input, shape index: {}]   ;;  %s833_s1 = inlined_call_operand.vmem [shape: f32[16,16,16], index: 1, kind: input, shape index: {}]   ;;  %s834_s2 = inlined_call_operand.vmem [shape: f32[2,16], index: 2, kind: input, shape index: {}]   ;;  %s835_s3 = inlined_call_operand.vmem [shape: f32[16,2], index: 3, kind: input, shape index: {}]   ;;  %s836_s4 = inlined_call_operand.vmem [shape: f32[2,16,2,2], index: 4, kind: output, shape index: {}]  }
   0x1   :  { %s691_s17 = smov 0   ;;  %s693_s18 = smov 0  }
   0x2   :  { %s695_s19 = smov 0  }
   0x3 LB: > { %s29_s20 = sadd.s32 1, %s652_s17  ;;  %s33_s21 = sadd.s32 1, %s656_s18  ;;  %s660_s19 = sphi %s695_s19, %s14_s19   ;;  %s656_s18 = sphi %s693_s18, %s840_s18   ;;  %s652_s17 = sphi %s691_s17, %s839_s17   ;;  %s648_s16 = sphi %s689_s16, %s838_s16   ;;  %s644_s15 = sphi %s687_s15, %s837_s15  }
   0x4   : > { %p31_p0 = scmp.ge.s32.totalorder %s29_s20, 2  ;;  %p565_p1 = scmp.ge.s32.totalorder %s660_s19, 1 }
   0x5   : > { %p210_p2 = scmp.lt.s32.totalorder %s660_s19, 33 }
   0x6   : > { %s842_s20 = smov (%p31_p0, %s29_s20), 0  ;;  %s844_s21 = smov (!%p31_p0, %s33_s21), %s656_s18 }
   0x7   : > { %p211_p3 = pnand %p565_p1, %p210_p2  ;;  %p35_p4 = scmp.ge.s32.totalorder %s844_s21, 16 }
   0x8   : > { %s566_s26 = sshll.u32 (!%p211_p3), %s648_s16, 4  ;;  %p258_p5 = scmp.lt.s32.totalorder (!%p211_p3), %s644_s15, 1 }
   0x9   : > { %s846_s21 = smov (%p35_p4, %s844_s21), 0  ;;  %214 = sbr.rel (%p211_p3) target bundleno = 315 (0x13b), region = 36 }
   0xa   : > { %p260_p6 = scmp.lt.s32.totalorder (!%p211_p3), %s566_s26, 255  ;;  %p272_p7 = scmp.lt.s32.totalorder (!%p211_p3), %s648_s16, 15 }
   0xe   : > { %v388_v0 = vld [vmem:[%s835_s3 + $0x8] sm:$0xff]  ;;  %v387_v1 = vld [vmem:[%s835_s3] sm:$0xff]  ;;  %s848_s15 = smov (!%p258_p5, %s644_s15), 1  ;;  %s850_s26 = smov (!%p260_p6, %s566_s26), 255  ;;  %vm320_vm0 = vcmask 130048   ;;  %vm442_vm1 = vcmask 9216  }
   0xf   : > { %580 = vmatpush.msra.mxu2 %v388_v0  ;;  %409 = vmatpush.msra.mxu0 %v388_v0  ;;  %s568_s27 = sshll.u32 %s848_s15, 9  ;;  %s567_s28 = sshll.u32 %s850_s26, 1 }
  0x10   : > { %s267_s29 = sadd.s32 %s568_s27, %s567_s28  ;;  %s852_s16 = smov (!%p272_p7, %s648_s16), 15 }
  0x11   : > { %581 = vmatpush.msra.mxu2 %v387_v1  ;;  %410 = vmatpush.msra.mxu0 %v387_v1  ;;  %s569_s30 = sshll.u32 %s267_s29, 3  ;;  %s579_s8 = sshll.u32 %s852_s16, 4 }
  0x12   : > { %s732_s7 = scalar_lea.vmem %s832_s0, %s569_s30  ;;  %s276_s11 = scalar_lea.vmem %s833_s1, %s579_s8 }
  0x13   : > { %v289_v2 = vld [vmem:[%s732_s7 + $0x8] sm:$0xff]  ;;  %v291_v3 = vld [vmem:[%s732_s7 + $0x18] sm:$0xff]  ;;  %v288_v17 = vld [vmem:[%s732_s7] sm:$0xff]  ;;  %s572_s12 = sshll.u32 %s848_s15, 4 }
  0x14   : > { %v293_v4 = vld [vmem:[%s732_s7 + $0x28] sm:$0xff]  ;;  %v295_v5 = vld [vmem:[%s732_s7 + $0x38] sm:$0xff]  ;;  %v352_v6 = vsel %vm320_vm0, %v289_v2, 0.0  ;;  %v353_v7 = vsel %vm320_vm0, %v291_v3, 0.0  ;;  %v290_v18 = vld [vmem:[%s732_s7 + $0x10] sm:$0xff]  ;;  %v321_v22 = vsel %vm320_vm0, %v288_v17, 0.0  ;;  %s285_s13 = sadd.s32 %s572_s12, %s852_s16 }
  0x15   : > { %v355_v8 = vsel %vm320_vm0, %v293_v4, 0.0  ;;  %v297_v9 = vld [vmem:[%s732_s7 + $0x48] sm:$0xff]  ;;  %v354_v10 = vadd.f32 %v353_v7, %v352_v6  ;;  %v357_v11 = vsel %vm320_vm0, %v295_v5, 0.0  ;;  %v299_v12 = vld [vmem:[%s732_s7 + $0x58] sm:$0xff]  ;;  %v292_v19 = vld [vmem:[%s732_s7 + $0x20] sm:$0xff]  ;;  %v322_v23 = vsel %vm320_vm0, %v290_v18, 0.0 }
  0x16   : > { %v301_v14 = vld [vmem:[%s732_s7 + $0x68] sm:$0xff]  ;;  %v359_v15 = vsel %vm320_vm0, %v297_v9, 0.0  ;;  %v361_v20 = vsel %vm320_vm0, %v299_v12, 0.0  ;;  %v294_v21 = vld [vmem:[%s732_s7 + $0x30] sm:$0xff]  ;;  %v324_v24 = vsel %vm320_vm0, %v292_v19, 0.0  ;;  %v303_v25 = vld [vmem:[%s732_s7 + $0x78] sm:$0xff]  ;;  %v323_v28 = vadd.f32 %v322_v23, %v321_v22 }
  0x17   : > { %v356_v13 = vadd.f32 %v355_v8, %v354_v10  ;;  %v296_v27 = vld [vmem:[%s732_s7 + $0x40] sm:$0xff]  ;;  %v363_v29 = vsel %vm320_vm0, %v301_v14, 0.0  ;;  %v326_v30 = vsel %vm320_vm0, %v294_v21, 0.0  ;;  %v305_v31 = vld [vmem:[%s732_s7 + $0x88] sm:$0xff]  ;;  %v298_v33 = vld [vmem:[%s732_s7 + $0x50] sm:$0xff]  ;;  %v365_v35 = vsel %vm320_vm0, %v303_v25, 0.0 }
  0x18   : > { %v325_v34 = vadd.f32 %v324_v24, %v323_v28  ;;  %v328_v36 = vsel %vm320_vm0, %v296_v27, 0.0  ;;  %v307_v37 = vld [vmem:[%s732_s7 + $0x98] sm:$0xff]  ;;  %v300_v39 = vld [vmem:[%s732_s7 + $0x60] sm:$0xff]  ;;  %v367_v41 = vsel %vm320_vm0, %v305_v31, 0.0  ;;  %v330_v42 = vsel %vm320_vm0, %v298_v33, 0.0  ;;  %v309_v43 = vld [vmem:[%s732_s7 + $0xa8] sm:$0xff] }
  0x19   : > { %v358_v16 = vadd.f32 %v357_v11, %v356_v13  ;;  %v302_v45 = vld [vmem:[%s732_s7 + $0x70] sm:$0xff]  ;;  %v369_v47 = vsel %vm320_vm0, %v307_v37, 0.0  ;;  %v332_v48 = vsel %vm320_vm0, %v300_v39, 0.0  ;;  %v311_v49 = vld [vmem:[%s732_s7 + $0xb8] sm:$0xff]  ;;  %v304_v51 = vld [vmem:[%s732_s7 + $0x80] sm:$0xff]  ;;  %v371_v53 = vsel %vm320_vm0, %v309_v43, 0.0 }
  0x1a   : > { %v327_v40 = vadd.f32 %v326_v30, %v325_v34  ;;  %v334_v54 = vsel %vm320_vm0, %v302_v45, 0.0  ;;  %v313_v55 = vld [vmem:[%s732_s7 + $0xc8] sm:$0xff]  ;;  %v306_v57 = vld [vmem:[%s732_s7 + $0x90] sm:$0xff]  ;;  %v373_v59 = vsel %vm320_vm0, %v311_v49, 0.0  ;;  %v336_v60 = vsel %vm320_vm0, %v304_v51, 0.0  ;;  %v315_v61 = vld [vmem:[%s732_s7 + $0xd8] sm:$0xff] }
  0x1b   : > { %v360_v26 = vadd.f32 %v359_v15, %v358_v16  ;;  %v308_v63 = vld [vmem:[%s732_s7 + $0xa0] sm:$0xff]  ;;  %v375_v1 = vsel %vm320_vm0, %v313_v55, 0.0  ;;  %v338_v2 = vsel %vm320_vm0, %v306_v57, 0.0  ;;  %v317_v3 = vld [vmem:[%s732_s7 + $0xe8] sm:$0xff]  ;;  %v310_v5 = vld [vmem:[%s732_s7 + $0xb0] sm:$0xff]  ;;  %v377_v7 = vsel %vm320_vm0, %v315_v61, 0.0 }
  0x1c   : > { %v329_v46 = vadd.f32 %v328_v36, %v327_v40  ;;  %v340_v8 = vsel %vm320_vm0, %v308_v63, 0.0  ;;  %v319_v9 = vld [vmem:[%s732_s7 + $0xf8] sm:$0xff]  ;;  %v312_v11 = vld [vmem:[%s732_s7 + $0xc0] sm:$0xff]  ;;  %v379_v13 = vsel %vm320_vm0, %v317_v3, 0.0  ;;  %v342_v14 = vsel %vm320_vm0, %v310_v5, 0.0  ;;  %v314_v16 = vld [vmem:[%s732_s7 + $0xd0] sm:$0xff] }
  0x1d   : > { %v362_v32 = vadd.f32 %v361_v20, %v360_v26  ;;  %v381_v18 = vsel %vm320_vm0, %v319_v9, 0.0  ;;  %v344_v19 = vsel %vm320_vm0, %v312_v11, 0.0  ;;  %v316_v21 = vld [vmem:[%s732_s7 + $0xe0] sm:$0xff]  ;;  %v384_v23 = vld [vmem:[%s276_s11 + $0x8] sm:$0xff]  ;;  %v346_v24 = vsel %vm320_vm0, %v314_v16, 0.0  ;;  %v318_v26 = vld [vmem:[%s732_s7 + $0xf0] sm:$0xff] }
  0x1e   : > { %v331_v52 = vadd.f32 %v330_v42, %v329_v46  ;;  %v348_v28 = vsel %vm320_vm0, %v316_v21, 0.0  ;;  %v350_v31 = vsel %vm320_vm0, %v318_v26, 0.0  ;;  %v383_v33 = vld [vmem:[%s276_s11] sm:$0xff]  ;;  %s573_s23 = sshll.u32 %s285_s13, 1 }
  0x1f   : > { %v364_v38 = vadd.f32 %v363_v29, %v362_v32  ;;  %s287_s26 = scalar_lea.vmem %s836_s4, %s573_s23 }
  0x20   : > { %v333_v58 = vadd.f32 %v332_v48, %v331_v52 }
  0x21   : > { %v366_v44 = vadd.f32 %v365_v35, %v364_v38  ;;  %v418_v38 = vld [vmem:[%s834_s2] sm:$0x3] }
  0x22   : > { %v335_v0 = vadd.f32 %v334_v54, %v333_v58 }
  0x23   : > { %v368_v50 = vadd.f32 %v367_v41, %v366_v44 }
  0x24   : > { %v337_v6 = vadd.f32 %v336_v60, %v335_v0 }
  0x25   : > { %v370_v56 = vadd.f32 %v369_v47, %v368_v50 }
  0x26   : > { %v339_v12 = vadd.f32 %v338_v2, %v337_v6 }
  0x27   : > { %v372_v62 = vadd.f32 %v371_v53, %v370_v56 }
  0x28   : > { %v341_v17 = vadd.f32 %v340_v8, %v339_v12 }
  0x29   : > { %v374_v4 = vadd.f32 %v373_v59, %v372_v62 }
  0x2a   : > { %v343_v22 = vadd.f32 %v342_v14, %v341_v17 }
  0x2b   : > { %v376_v10 = vadd.f32 %v375_v1, %v374_v4 }
  0x2c   : > { %v345_v27 = vadd.f32 %v344_v19, %v343_v22 }
  0x2d   : > { %v378_v15 = vadd.f32 %v377_v7, %v376_v10 }
  0x2e   : > { %v347_v30 = vadd.f32 %v346_v24, %v345_v27 }
  0x2f   : > { %v380_v20 = vadd.f32 %v379_v13, %v378_v15 }
  0x30   : > { %v349_v32 = vadd.f32 %v348_v28, %v347_v30 }
  0x31   : > { %v382_v25 = vadd.f32 %v381_v18, %v380_v20 }
  0x32   : > { %v351_v34 = vadd.f32 %v350_v31, %v349_v32 }
  0x33   : > { %v386_v29 = vmul.f32 %v384_v23, %v382_v25 }
  0x34   : > { %v385_v35 = vmul.f32 %v383_v33, %v351_v34 }
  0x35   : > { %575 = vmatmul.msk.f32.vlgmr.msra.gmra.mxu2 %vm320_vm0, %v386_v29 }
  0x36   : > { %574 = vmatmul.msk.f32.vlgmr.msra.gmra.mxu0 %vm320_vm0, %v385_v35 }
  0xb3   : > { %v412_v37 = vpop.f32.mrf.mxu0 }
  0xb8   : > { %v415_v36 = vpop.f32.mrf.mxu2 }
  0xb9   : > { %436 = vmatpush.msra.mxu1 %v415_v36 }
  0xbb   : > { %437 = vmatpush.msra.mxu1 %v412_v37 }
  0xbc   : > { %576 = vmatmul.msk.f32.vlgmr.msra.gmra.mxu1 %vm320_vm0, %v418_v38 }
 0x139   : > { %v439_v39 = vpop.f32.mrf.mxu1 }
 0x13a   : > { %443 = vst.msk [vmem:[%s287_s26] sm:$0x3] %vm442_vm1, %v439_v39 }
 0x13b PF: > { %s14_s19 = sadd.s32 1, %s660_s19   ;;  %s837_s15 = smov %s652_s17 }
 0x13c   : > { %p11_p8 = scmp.ge.s32.totalorder %s14_s19, 34   ;;  %s838_s16 = smov %s656_s18 }
 0x13d   : > { %s839_s17 = smov %s842_s20  ;;  %s840_s18 = smov %s846_s21 }
 0x13e   :  { %13 = sbr.rel (!%p11_p8) target bundleno = 3 (0x3), region = 69 }

</bundles_post_ra>
